<compile_context>
chip_gen: v7x
topology: tpu7x:2x2x1
jax: 0.10.0
libtpu: 0.0.40
codegen_flags: <defaults>
</compile_context>

<pallas_src>
import jax
import jax.numpy as jnp
from jax.experimental import pallas as pl
from jax.experimental.pallas import tpu as pltpu


def _largest_divisor_within(n: int, max_val: int) -> int:
    """Largest divisor of n that is <= max_val (>= 1)."""
    best = 1
    for d in range(1, n + 1):
        if n % d == 0 and d <= max_val:
            best = d
    return best


def tv_loss_pallas(x, tv_weight: float = 1.0):
    """TVLoss forward: weight * 2 * (h_tv/count_h + w_tv/count_w) / N."""
    N, C, H, W = x.shape
    count_h = C * (H - 1) * W
    count_w = C * H * (W - 1)
    # Fold all normalisation into per-step constants (single-pass reduction,
    # no separate finalize / divide kernel).
    scale = 2.0 * float(tv_weight) / float(N)
    inv_ch = scale / float(count_h)
    inv_cw = scale / float(count_w)

    # Flatten (N, C) -> planes; TV diffs never cross a plane boundary, so we
    # can tile the reduction over plane blocks with no halo.
    NC = N * C
    x_planes = x.reshape(NC, H, W)

    # Pick the biggest plane block whose (double-buffered) tile stays small:
    # cap a single input block at ~2 MiB so it is safe under the default
    # scoped-VMEM limits on v5e/v6e/v7x without touching vmem_limit_bytes.
    # TODO(synk): for very large H*W a single plane may exceed VMEM; that would
    #             need an additional row-tile axis with a 1-row halo.
    max_planes = max(1, (2 * 1024 * 1024) // (H * W * 4))
    bp = _largest_divisor_within(NC, max_planes)
    grid = (NC // bp,)

    def kernel(x_ref, o_ref):
        # Output block (1,1) is revisited every grid step -> accumulator.
        @pl.when(pl.program_id(0) == 0)
        def _():
            o_ref[...] = jnp.zeros_like(o_ref)

        xb = x_ref[...].astype(jnp.float32)          # (bp, H, W)
        h_d = xb[:, 1:, :] - xb[:, :-1, :]           # diffs along H (sublanes)
        w_d = xb[:, :, 1:] - xb[:, :, :-1]           # diffs along W (lanes)
        contrib = jnp.sum(h_d * h_d) * inv_ch + jnp.sum(w_d * w_d) * inv_cw
        o_ref[...] += contrib                        # scalar broadcast to (1,1)

    out = pl.pallas_call(
        kernel,
        out_shape=jax.ShapeDtypeStruct((1, 1), jnp.float32),
        grid=grid,
        in_specs=[pl.BlockSpec((bp, H, W), lambda i: (i, 0, 0))],
        out_specs=pl.BlockSpec((1, 1), lambda i: (0, 0)),
        # The single grid axis is a reduction over the shared scalar output,
        # so it must stay "arbitrary".
        compiler_params=pltpu.CompilerParams(dimension_semantics=("arbitrary",)),
    )(x_planes)
    return out[0, 0]


class TVLossPallas:
    """JAX/Pallas port of the PyTorch TVLoss module."""

    def __init__(self, TVLoss_weight: float = 1.0):
        self.TVLoss_weight = float(TVLoss_weight)

    def __call__(self, x):
        return tv_loss_pallas(x, self.TVLoss_weight)


def tv_loss_reference(x, tv_weight: float = 1.0):
    """Pure-JAX reference mirroring the PyTorch forward."""
    N, C, H, W = x.shape
    count_h = C * (H - 1) * W
    count_w = C * H * (W - 1)
    h_tv = jnp.sum((x[:, :, 1:, :] - x[:, :, :-1, :]) ** 2)
    w_tv = jnp.sum((x[:, :, :, 1:] - x[:, :, :, :-1]) ** 2)
    return tv_weight * 2.0 * (h_tv / count_h + w_tv / count_w) / N


if __name__ == "__main__":
    key = jax.random.PRNGKey(0)
    # Small NCHW input consistent with the module: batch=2, channels=4, 16x16.
    x = jax.random.uniform(key, (2, 4, 16, 16), jnp.float32)

    loss_mod = TVLossPallas(TVLoss_weight=1.0)
    loss = jax.jit(loss_mod.__call__)(x)
    jax.block_until_ready(loss)

    ref = tv_loss_reference(x, 1.0)
    assert jnp.allclose(loss, ref, rtol=1e-5, atol=1e-6), (float(loss), float(ref))
    print("KERNEL_OK")
</pallas_src>

<mosaic_0001>
module attributes {stable_mosaic.version = 11 : i64} {
  func.func @kernel(%arg0: i32, %arg1: memref<8x16x16xf32, #tpu.memory_space<vmem>>, %arg2: memref<1x1xf32, #tpu.memory_space<vmem>>) attributes {dimension_semantics = [#tpu.dimension_semantics<arbitrary>], iteration_bounds = array<i64: 1>, scalar_prefetch = 0 : i64, scratch_operands = 0 : i64, tpu.core_type = #tpu.core_type<tc>, window_params = [{transform_indices = @transform_0, window_bounds = array<i64: 8, 16, 16>}, {pipeline_mode = #tpu.pipeline_mode<synchronous>, transform_indices = @transform_1, window_bounds = array<i64: 1, 1>}]} {
    %c0_i32 = arith.constant 0 : i32
    %0 = arith.cmpi eq, %arg0, %c0_i32 : i32
    %1 = arith.extui %0 : i1 to i32
    %c0_i32_0 = arith.constant 0 : i32
    %2 = arith.cmpi ne, %1, %c0_i32_0 : i32
    scf.if %2 {
      %cst_10 = arith.constant 0.000000e+00 : f32
      %27 = vector.broadcast %cst_10 : f32 to vector<1x1xf32>
      %c0_11 = arith.constant 0 : index
      %c0_12 = arith.constant 0 : index
      %28 = vector.load %arg2[%c0_11, %c0_12] : memref<1x1xf32, #tpu.memory_space<vmem>>, vector<1x1xf32>
      tpu.vector_store %arg2[%c0_11, %c0_12], %27 {strides = array<i32>} : memref<1x1xf32, #tpu.memory_space<vmem>>, vector<1x1xf32>,
    } else {
    }
    %c0 = arith.constant 0 : index
    %c0_1 = arith.constant 0 : index
    %c0_2 = arith.constant 0 : index
    %3 = vector.load %arg1[%c0, %c0_1, %c0_2] : memref<8x16x16xf32, #tpu.memory_space<vmem>>, vector<8x16x16xf32>
    %4 = vector.extract_strided_slice %3 {offsets = [0, 1, 0], sizes = [8, 15, 16], strides = [1, 1, 1]} : vector<8x16x16xf32> to vector<8x15x16xf32>
    %5 = vector.extract_strided_slice %3 {offsets = [0, 0, 0], sizes = [8, 15, 16], strides = [1, 1, 1]} : vector<8x16x16xf32> to vector<8x15x16xf32>
    %6 = arith.subf %4, %5 : vector<8x15x16xf32>
    %7 = vector.extract_strided_slice %3 {offsets = [0, 0, 1], sizes = [8, 16, 15], strides = [1, 1, 1]} : vector<8x16x16xf32> to vector<8x16x15xf32>
    %8 = vector.extract_strided_slice %3 {offsets = [0, 0, 0], sizes = [8, 16, 15], strides = [1, 1, 1]} : vector<8x16x16xf32> to vector<8x16x15xf32>
    %9 = arith.subf %7, %8 : vector<8x16x15xf32>
    %10 = arith.mulf %6, %6 : vector<8x15x16xf32>
    %11 = vector.shape_cast %10 : vector<8x15x16xf32> to vector<1x8x15x16xf32>
    %cst = arith.constant dense<0.000000e+00> : vector<1xf32>
    %12 = vector.multi_reduction <add>, %11, %cst [1, 2, 3] : vector<1x8x15x16xf32> to vector<1xf32>
    %13 = vector.shape_cast %12 : vector<1xf32> to vector<1x1x1x1xf32>
    %14 = vector.extract %13[0, 0, 0, 0] : f32 from vector<1x1x1x1xf32>
    %cst_3 = arith.constant 0.00104166672 : f32
    %15 = arith.mulf %14, %cst_3 : f32
    %16 = arith.mulf %9, %9 : vector<8x16x15xf32>
    %17 = vector.shape_cast %16 : vector<8x16x15xf32> to vector<1x8x16x15xf32>
    %cst_4 = arith.constant dense<0.000000e+00> : vector<1xf32>
    %18 = vector.multi_reduction <add>, %17, %cst_4 [1, 2, 3] : vector<1x8x16x15xf32> to vector<1xf32>
    %19 = vector.shape_cast %18 : vector<1xf32> to vector<1x1x1x1xf32>
    %20 = vector.extract %19[0, 0, 0, 0] : f32 from vector<1x1x1x1xf32>
    %cst_5 = arith.constant 0.00104166672 : f32
    %21 = arith.mulf %20, %cst_5 : f32
    %22 = arith.addf %15, %21 : f32
    %c0_6 = arith.constant 0 : index
    %c0_7 = arith.constant 0 : index
    %23 = vector.load %arg2[%c0_6, %c0_7] : memref<1x1xf32, #tpu.memory_space<vmem>>, vector<1x1xf32>
    %24 = vector.broadcast %22 : f32 to vector<1x1xf32>
    %25 = arith.addf %23, %24 : vector<1x1xf32>
    %c0_8 = arith.constant 0 : index
    %c0_9 = arith.constant 0 : index
    %26 = vector.load %arg2[%c0_8, %c0_9] : memref<1x1xf32, #tpu.memory_space<vmem>>, vector<1x1xf32>
    tpu.vector_store %arg2[%c0_8, %c0_9], %25 {strides = array<i32>} : memref<1x1xf32, #tpu.memory_space<vmem>>, vector<1x1xf32>,
    return
  }
  func.func @transform_0(%arg0: i32) -> (i32, i32, i32) {
    %c0_i32 = arith.constant 0 : i32
    %c0_i32_0 = arith.constant 0 : i32
    %c0_i32_1 = arith.constant 0 : i32
    return %arg0, %c0_i32, %c0_i32_0 : i32, i32, i32
  }
  func.func @transform_1(%arg0: i32) -> (i32, i32) {
    %c0_i32 = arith.constant 0 : i32
    %c0_i32_0 = arith.constant 0 : i32
    %c0_i32_1 = arith.constant 0 : i32
    return %c0_i32, %c0_i32_0 : i32, i32
  }
}

</mosaic_0001>

<bundles_post_ra>
// kernel: a_call__.1
= control target key start
LH: loop header
LB: loop body
LE: loop exit
PB: predicated region body
PF: predicated region fallthrough
CT: control target
= control target key end

     0   :  { %6 = vsyncpa [#allocation3], 0  ;;  %s703_s0 = inlined_call_operand.hbm [shape: f32[8,16,16], index: 0, kind: input, shape index: {}]   ;;  %s704_s1 = inlined_call_operand.hbm [shape: f32[1,1], index: 1, kind: output, shape index: {}]  }
   0x1   :  { %7 = vsyncpa [#allocation4], 0  ;;  %s500_s6 = smov [#allocation2]   ;;  %s452_s10 = scalar_lea.hbm %s703_s0, 2048 }
   0x2   :  { %s13_s7 = sshll.u32 %s500_s6, 4  ;;  %p453_p0 = scmp.ne.s32.totalorder %s703_s0, %s452_s10  ;;  %s14_s7 = int_to_ptr.vmem [resolvable:$true] %s13_s7 }
   0x3   :  { %p456_p1 = scmp.lt.u32.totalorder %s452_s10, %s703_s0 }
   0x5   :  { %p458_p2 = pnand %p456_p1, %p453_p0 }
   0x7   :  { %461 = shalt.err (!%p458_p2)
}
   0x8   :  { %s462_s15 = scalar_lea.vmem %s14_s7, 2048  ;;  %p467_p4 = scmp.lt.s32.totalorder %s14_s7, %s14_s7 }
   0x9   :  { %p463_p3 = scmp.ne.s32.totalorder %s14_s7, %s462_s15  ;;  %p468_p5 = scmp.lt.s32.totalorder %s462_s15, %s462_s15 }
   0xb   :  { %p469_p6 = por %p468_p5, %p467_p4 }
   0xd   :  { %p470_p7 = pnand %p469_p6, %p463_p3 }
   0xf   :  { %473 = shalt.err (!%p470_p7)
}
  0x10   :  { %s501_s16 = smov 128   ;;  %s502_s17 = smov 8  }
  0x11   :  { %19 = dma.hbm_to_vmem [thread:$0]  %s703_s0, 2048, %s14_s7, [#allocation3], %s501_s16, %s501_s16, %s502_s17  }
  0x12   :  { %496 = dma.done.wait [#allocation3], 2048  }
  0x13   :  { %497 = vsyncadd [#allocation3], 4294965248  ;;  %v529_v0 = vld [vmem:[#allocation2] sm:$0xff]  ;;  %v531_v1 = vld [vmem:[#allocation2 + $0x10] sm:$0xff]  ;;  %s503_s20 = smov 1   ;;  %vm61_vm0 = vcmask 1040384  }
  0x14   :  { %118 = vrot.lane.b32.xlu0 %v529_v0, %s503_s20  ;;  %122 = vrot.lane.b32.xlu1 %v531_v1, %s503_s20  ;;  %v535_v2 = vld [vmem:[#allocation2 + $0x8] sm:$0xff]  ;;  %v537_v3 = vld [vmem:[#allocation2 + $0x18] sm:$0xff]  ;;  %v541_v4 = vld [vmem:[#allocation2 + $0x20] sm:$0xff]  ;;  %v62_v16 = vrot.slane %v529_v0, 7  ;;  %v65_v18 = vrot.slane %v531_v1, 7  ;;  %vm214_vm1 = vcmask 1046528  }
  0x15   :  { %v543_v5 = vld [vmem:[#allocation2 + $0x28] sm:$0xff]  ;;  %v547_v6 = vld [vmem:[#allocation2 + $0x30] sm:$0xff]  ;;  %v549_v7 = vld [vmem:[#allocation2 + $0x38] sm:$0xff]  ;;  %v63_v17 = vrot.slane %v535_v2, 7  ;;  %v66_v20 = vrot.slane %v537_v3, 7  ;;  %v68_v28 = vrot.slane %v541_v4, 7 }
  0x16   :  { %v553_v8 = vld [vmem:[#allocation2 + $0x40] sm:$0xff]  ;;  %v555_v9 = vld [vmem:[#allocation2 + $0x48] sm:$0xff]  ;;  %v559_v10 = vld [vmem:[#allocation2 + $0x50] sm:$0xff]  ;;  %v102_v21 = vsub.f32 %v529_v0, %v62_v16  ;;  %v104_v25 = vsub.f32 %v531_v1, %v65_v18  ;;  %v69_v29 = vrot.slane %v543_v5, 7  ;;  %vm255_vm2 = vcmask 130048   ;;  %s504_s0 = smov 127  }
  0x17   :  { %v561_v11 = vld [vmem:[#allocation2 + $0x58] sm:$0xff]  ;;  %v565_v12 = vld [vmem:[#allocation2 + $0x60] sm:$0xff]  ;;  %v567_v13 = vld [vmem:[#allocation2 + $0x68] sm:$0xff]  ;;  %v64_v19 = vsel %vm61_vm0, %v62_v16, %v63_v17  ;;  %v67_v23 = vsel %vm61_vm0, %v65_v18, %v66_v20  ;;  %vm257_vm3 = vcmask 129024   ;;  %v106_v35 = vsub.f32 %v541_v4, %v68_v28  ;;  %s506_s26 = smov [#allocation5]  }
  0x18   :  { %120 = vrot.lane.b32.xlu0 %v535_v2, %s503_s20  ;;  %124 = vrot.lane.b32.xlu1 %v537_v3, %s503_s20  ;;  %v571_v14 = vld [vmem:[#allocation2 + $0x70] sm:$0xff]  ;;  %v573_v15 = vld [vmem:[#allocation2 + $0x78] sm:$0xff]  ;;  %v103_v22 = vsub.f32 %v535_v2, %v64_v19  ;;  %v182_v24 = vmul.f32 %v102_v21, %v102_v21  ;;  %v105_v27 = vsub.f32 %v537_v3, %v67_v23  ;;  %v71_v40 = vrot.slane %v547_v6, 7  ;;  %s432_s27 = sshll.u32 %s506_s26, 4  ;;  %s433_s27 = int_to_ptr.vmem [resolvable:$true] %s432_s27 }
  0x19   :  { %v184_v31 = vmul.f32 %v104_v25, %v104_v25  ;;  %v70_v34 = vsel %vm61_vm0, %v68_v28, %v69_v29  ;;  %v72_v41 = vrot.slane %v549_v7, 7  ;;  %v186_v49 = vmul.f32 %v106_v35, %v106_v35  ;;  %s474_s28 = scalar_lea.vmem %s433_s27, 16  ;;  %s478_s29 = scalar_lea.vmem %s433_s27, 32 }
  0x1a   :  { %v183_v26 = vmul.f32 %v103_v22, %v103_v22  ;;  %v215_v30 = vrot.slane %v182_v24, 1  ;;  %v185_v33 = vmul.f32 %v105_v27, %v105_v27  ;;  %v107_v39 = vsub.f32 %v543_v5, %v70_v34  ;;  %p475_p8 = scmp.ne.s32.totalorder %s433_s27, %s474_s28  ;;  %p479_p9 = scmp.lt.s32.totalorder %s433_s27, %s433_s27 }
  0x1b   :  { %v218_v36 = vrot.slane %v184_v31, 1  ;;  %v73_v51 = vsel %vm61_vm0, %v71_v40, %v72_v41  ;;  %v221_v60 = vrot.slane %v186_v49, 1  ;;  %v108_v62 = vsub.f32 %v547_v6, %v71_v40  ;;  %p480_p10 = scmp.lt.s32.totalorder %s478_s29, %s474_s28 }
  0x1c   :  { %126 = vrot.lane.b32.xlu0 %v541_v4, %s503_s20  ;;  %128 = vrot.lane.b32.xlu1 %v543_v5, %s503_s20  ;;  %v216_v32 = vrot.slane %v183_v26, 1  ;;  %v219_v38 = vrot.slane %v185_v33, 1  ;;  %v187_v50 = vmul.f32 %v107_v39, %v107_v39  ;;  %v109_v63 = vsub.f32 %v549_v7, %v73_v51 }
  0x1d   :  { %v188_v23 = vmul.f32 %v108_v62, %v108_v62  ;;  %vm378_vm4 = vcmask 121856   ;;  %vm27_vm5 = vcmask 0   ;;  %p481_p11 = por %p480_p10, %p479_p9 }
  0x1e   :  { %v217_v37 = vsel %vm214_vm1, %v215_v30, %v216_v32  ;;  %v258_v45 = vsel %vm257_vm3, %v216_v32, 0.0  ;;  %v220_v48 = vsel %vm214_vm1, %v218_v36, %v219_v38  ;;  %v222_v61 = vrot.slane %v187_v50, 1 }
  0x1f   :  { %v256_v44 = vsel %vm255_vm2, %v217_v37, 0.0  ;;  %v260_v56 = vsel %vm255_vm2, %v220_v48, 0.0  ;;  %v189_v24 = vmul.f32 %v109_v63, %v109_v63  ;;  %v77_v36 = vrot.slane %v559_v10, 7  ;;  %p482_p12 = pnand %p481_p11, %p475_p8 }
  0x20   :  { %130 = vrot.lane.b32.xlu0 %v547_v6, %s503_s20  ;;  %132 = vrot.lane.b32.xlu1 %v549_v7, %s503_s20  ;;  %v259_v53 = vadd.f32 %v258_v45, %v256_v44  ;;  %v223_v22 = vsel %vm214_vm1, %v221_v60, %v222_v61  ;;  %v78_v37 = vrot.slane %v561_v11, 7 }
  0x21   :  { %v264_v30 = vsel %vm255_vm2, %v223_v22, 0.0  ;;  %v225_v33 = vrot.slane %v189_v24, 1 }
  0x22   :  { %v261_v17 = vadd.f32 %v260_v56, %v259_v53  ;;  %v112_v56 = vsub.f32 %v559_v10, %v77_v36 }
  0x24   :  { %134 = vrot.lane.b32.xlu0 %v553_v8, %s503_s20  ;;  %136 = vrot.lane.b32.xlu1 %v555_v9, %s503_s20 }
  0x28   :  { %138 = vrot.lane.b32.xlu0 %v559_v10, %s503_s20  ;;  %140 = vrot.lane.b32.xlu1 %v561_v11, %s503_s20 }
  0x2c   :  { %142 = vrot.lane.b32.xlu0 %v565_v12, %s503_s20  ;;  %144 = vrot.lane.b32.xlu1 %v567_v13, %s503_s20 }
  0x30   :  { %146 = vrot.lane.b32.xlu0 %v571_v14, %s503_s20  ;;  %148 = vrot.lane.b32.xlu1 %v573_v15, %s503_s20 }
  0x86   :  { %v119_v42 = vpop.permute.xlu0 %118  ;;  %v123_v43 = vpop.permute.xlu1 %122 }
  0x87   :  { %v166_v46 = vsub.f32 %v529_v0, %v119_v42  ;;  %v168_v47 = vsub.f32 %v531_v1, %v123_v43  ;;  %v74_v0 = vrot.slane %v553_v8, 7  ;;  %v75_v1 = vrot.slane %v555_v9, 7 }
  0x89   :  { %v298_v52 = vmul.f32 %v166_v46, %v166_v46  ;;  %v300_v57 = vmul.f32 %v168_v47, %v168_v47  ;;  %v76_v25 = vsel %vm61_vm0, %v74_v0, %v75_v1  ;;  %v110_v34 = vsub.f32 %v553_v8, %v74_v0 }
  0x8a   :  { %v121_v54 = vpop.permute.xlu0 %120  ;;  %v125_v55 = vpop.permute.xlu1 %124  ;;  %v111_v35 = vsub.f32 %v555_v9, %v76_v25  ;;  %v79_v47 = vsel %vm61_vm0, %v77_v36, %v78_v37  ;;  %v270_v0 = vsel %vm257_vm3, %v225_v33, 0.0 }
  0x8b   :  { %v167_v58 = vsub.f32 %v535_v2, %v121_v54  ;;  %330 = vrot.lane.b32.xlu0 %v298_v52, %s504_s0  ;;  %v169_v59 = vsub.f32 %v537_v3, %v125_v55  ;;  %v262_v2 = vsel %vm257_vm3, %v219_v38, 0.0  ;;  %v190_v45 = vmul.f32 %v110_v34, %v110_v34 }
  0x8c   :  { %v263_v27 = vadd.f32 %v262_v2, %v261_v17  ;;  %v191_v46 = vmul.f32 %v111_v35, %v111_v35  ;;  %v192_v17 = vmul.f32 %v112_v56, %v112_v56 }
  0x8d   :  { %v299_v16 = vmul.f32 %v167_v58, %v167_v58  ;;  %v301_v20 = vmul.f32 %v169_v59, %v169_v59  ;;  %v227_v54 = vrot.slane %v190_v45, 1  ;;  %v80_v58 = vrot.slane %v565_v12, 7 }
  0x8e   :  { %v127_v18 = vpop.permute.xlu0 %126  ;;  %v129_v19 = vpop.permute.xlu1 %128  ;;  %v265_v39 = vadd.f32 %v264_v30, %v263_v27  ;;  %v228_v55 = vrot.slane %v191_v46, 1  ;;  %v81_v59 = vrot.slane %v567_v13, 7  ;;  %v83_v30 = vrot.slane %v571_v14, 7 }
  0x8f   :  { %334 = vrot.lane.b32.xlu0 %v300_v57, %s504_s0  ;;  %332 = vrot.lane.b32.xlu1 %v299_v16, %s504_s0  ;;  %v170_v3 = vsub.f32 %v541_v4, %v127_v18  ;;  %v171_v21 = vsub.f32 %v543_v5, %v129_v19  ;;  %v224_v5 = vrot.slane %v188_v23, 1  ;;  %v113_v57 = vsub.f32 %v561_v11, %v79_v47 }
  0x90   :  { %v82_v19 = vsel %vm61_vm0, %v80_v58, %v81_v59 }
  0x91   :  { %v302_v26 = vmul.f32 %v170_v3, %v170_v3  ;;  %v303_v31 = vmul.f32 %v171_v21, %v171_v21  ;;  %v226_v44 = vsel %vm214_vm1, %v224_v5, %v225_v33  ;;  %v193_v18 = vmul.f32 %v113_v57, %v113_v57 }
  0x92   :  { %v131_v28 = vpop.permute.xlu0 %130  ;;  %v133_v29 = vpop.permute.xlu1 %132  ;;  %v268_v52 = vsel %vm255_vm2, %v226_v44, 0.0  ;;  %v274_v5 = vsel %vm257_vm3, %v228_v55, 0.0 }
  0x93   :  { %336 = vrot.lane.b32.xlu1 %v301_v20, %s504_s0  ;;  %v172_v32 = vsub.f32 %v547_v6, %v131_v28  ;;  %338 = vrot.lane.b32.xlu0 %v302_v26, %s504_s0  ;;  %v173_v4 = vsub.f32 %v549_v7, %v133_v29  ;;  %v266_v6 = vsel %vm257_vm3, %v222_v61, 0.0  ;;  %v230_v26 = vrot.slane %v192_v17, 1 }
  0x94   :  { %v267_v49 = vadd.f32 %v266_v6, %v265_v39  ;;  %v231_v27 = vrot.slane %v193_v18, 1  ;;  %v114_v28 = vsub.f32 %v565_v12, %v80_v58  ;;  %v115_v29 = vsub.f32 %v567_v13, %v82_v19 }
  0x95   :  { %v304_v38 = vmul.f32 %v172_v32, %v172_v32  ;;  %v305_v42 = vmul.f32 %v173_v4, %v173_v4  ;;  %v116_v39 = vsub.f32 %v571_v14, %v83_v30 }
  0x96   :  { %v135_v40 = vpop.permute.xlu0 %134  ;;  %v137_v41 = vpop.permute.xlu1 %136  ;;  %v269_v61 = vadd.f32 %v268_v52, %v267_v49  ;;  %v232_v34 = vsel %vm214_vm1, %v230_v26, %v231_v27  ;;  %v194_v35 = vmul.f32 %v114_v28, %v114_v28  ;;  %v195_v36 = vmul.f32 %v115_v29, %v115_v29 }
  0x97   :  { %340 = vrot.lane.b32.xlu1 %v303_v31, %s504_s0  ;;  %v174_v7 = vsub.f32 %v553_v8, %v135_v40  ;;  %342 = vrot.lane.b32.xlu0 %v304_v38, %s504_s0  ;;  %v175_v43 = vsub.f32 %v555_v9, %v137_v41  ;;  %v84_v31 = vrot.slane %v573_v15, 7  ;;  %v276_v37 = vsel %vm255_vm2, %v232_v34, 0.0 }
  0x98   :  { %v271_v20 = vadd.f32 %v270_v0, %v269_v61  ;;  %v233_v38 = vrot.slane %v194_v35, 1  ;;  %v234_v41 = vrot.slane %v195_v36, 1 }
  0x99   :  { %v306_v48 = vmul.f32 %v174_v7, %v174_v7  ;;  %v307_v53 = vmul.f32 %v175_v43, %v175_v43  ;;  %v196_v7 = vmul.f32 %v116_v39, %v116_v39 }
  0x9a   :  { %v139_v50 = vpop.permute.xlu0 %138  ;;  %v141_v51 = vpop.permute.xlu1 %140  ;;  %v235_v44 = vsel %vm214_vm1, %v233_v38, %v234_v41 }
  0x9b   :  { %344 = vrot.lane.b32.xlu1 %v305_v42, %s504_s0  ;;  %v176_v8 = vsub.f32 %v559_v10, %v139_v50  ;;  %346 = vrot.lane.b32.xlu0 %v306_v48, %s504_s0  ;;  %v177_v9 = vsub.f32 %v561_v11, %v141_v51  ;;  %v229_v11 = vsel %vm214_vm1, %v227_v54, %v228_v55  ;;  %v278_v42 = vsel %vm257_vm3, %v231_v27, 0.0 }
  0x9c   :  { %v272_v22 = vsel %vm255_vm2, %v229_v11, 0.0  ;;  %v280_v46 = vsel %vm255_vm2, %v235_v44, 0.0  ;;  %v236_v47 = vrot.slane %v196_v7, 1  ;;  %v282_v50 = vsel %vm257_vm3, %v234_v41, 0.0 }
  0x9d   :  { %v308_v60 = vmul.f32 %v176_v8, %v176_v8  ;;  %v309_v1 = vmul.f32 %v177_v9, %v177_v9  ;;  %v273_v4 = vadd.f32 %v272_v22, %v271_v20 }
  0x9e   :  { %v143_v62 = vpop.permute.xlu0 %142  ;;  %v145_v63 = vpop.permute.xlu1 %144 }
  0x9f   :  { %348 = vrot.lane.b32.xlu1 %v307_v53, %s504_s0  ;;  %v178_v16 = vsub.f32 %v565_v12, %v143_v62  ;;  %350 = vrot.lane.b32.xlu0 %v308_v60, %s504_s0  ;;  %v179_v10 = vsub.f32 %v567_v13, %v145_v63  ;;  %v85_v12 = vsel %vm61_vm0, %v83_v30, %v84_v31 }
  0xa0   :  { %v275_v13 = vadd.f32 %v274_v5, %v273_v4  ;;  %v117_v40 = vsub.f32 %v573_v15, %v85_v12 }
  0xa1   :  { %v310_v2 = vmul.f32 %v178_v16, %v178_v16  ;;  %v311_v23 = vmul.f32 %v179_v10, %v179_v10 }
  0xa2   :  { %v147_v3 = vpop.permute.xlu0 %146  ;;  %v149_v21 = vpop.permute.xlu1 %148  ;;  %v277_v6 = vadd.f32 %v276_v37, %v275_v13  ;;  %v197_v43 = vmul.f32 %v117_v40, %v117_v40 }
  0xa3   :  { %352 = vrot.lane.b32.xlu1 %v309_v1, %s504_s0  ;;  %v180_v24 = vsub.f32 %v571_v14, %v147_v3  ;;  %354 = vrot.lane.b32.xlu0 %v310_v2, %s504_s0  ;;  %v181_v25 = vsub.f32 %v573_v15, %v149_v21 }
  0xa4   :  { %v279_v45 = vadd.f32 %v278_v42, %v277_v6  ;;  %v237_v48 = vrot.slane %v197_v43, 1  ;;  %v505_v6 = vmov 0.0  }
  0xa5   :  { %v312_v32 = vmul.f32 %v180_v24, %v180_v24  ;;  %v313_v33 = vmul.f32 %v181_v25, %v181_v25  ;;  %28 = vst.msk [vmem:[#allocation5] sm:$0x1] %vm27_vm5, %v505_v6 }
  0xa6   :  { %v281_v49 = vadd.f32 %v280_v46, %v279_v45  ;;  %v238_v14 = vsel %vm214_vm1, %v236_v47, %v237_v48  ;;  %v286_v53 = vsel %vm257_vm3, %v237_v48, 0.0 }
  0xa7   :  { %356 = vrot.lane.b32.xlu1 %v311_v23, %s504_s0  ;;  %358 = vrot.lane.b32.xlu0 %v312_v32, %s504_s0  ;;  %v284_v15 = vsel %vm255_vm2, %v238_v14, 0.0 }
  0xa8   :  { %v283_v51 = vadd.f32 %v282_v50, %v281_v49 }
  0xaa   :  { %v285_v52 = vadd.f32 %v284_v15, %v283_v51 }
  0xab   :  { %360 = vrot.lane.b32.xlu1 %v313_v33, %s504_s0 }
  0xac   :  { %v287_v8 = vadd.f32 %v286_v53, %v285_v52  ;;  %v421_v53 = vld [vmem:[#allocation5] sm:$0x1] }
  0xc6   :  { %288 = vadd.xlane.f32.xlu0 %v287_v8 }
  0xfd   :  { %v331_v9 = vpop.permute.xlu0 %330 }
  0xfe   :  { %v379_v56 = vsel %vm378_vm4, %v331_v9, 0.0 }
 0x101   :  { %v333_v54 = vpop.permute.xlu1 %332  ;;  %v335_v55 = vpop.permute.xlu0 %334 }
 0x102   :  { %v380_v57 = vsel %vm378_vm4, %v333_v54, 0.0  ;;  %v382_v59 = vsel %vm378_vm4, %v335_v55, 0.0 }
 0x103   :  { %v381_v58 = vadd.f32 %v380_v57, %v379_v56 }
 0x105   :  { %v383_v60 = vadd.f32 %v382_v59, %v381_v58  ;;  %v337_v61 = vpop.permute.xlu1 %336  ;;  %v339_v62 = vpop.permute.xlu0 %338 }
 0x106   :  { %v384_v63 = vsel %vm378_vm4, %v337_v61, 0.0  ;;  %v386_v0 = vsel %vm378_vm4, %v339_v62, 0.0 }
 0x107   :  { %v385_v1 = vadd.f32 %v384_v63, %v383_v60 }
 0x109   :  { %v387_v16 = vadd.f32 %v386_v0, %v385_v1  ;;  %v341_v10 = vpop.permute.xlu1 %340  ;;  %v343_v11 = vpop.permute.xlu0 %342 }
 0x10a   :  { %v388_v17 = vsel %vm378_vm4, %v341_v10, 0.0  ;;  %v390_v18 = vsel %vm378_vm4, %v343_v11, 0.0 }
 0x10b   :  { %v389_v19 = vadd.f32 %v388_v17, %v387_v16 }
 0x10d   :  { %v391_v2 = vadd.f32 %v390_v18, %v389_v19  ;;  %v345_v20 = vpop.permute.xlu1 %344  ;;  %v347_v3 = vpop.permute.xlu0 %346 }
 0x10e   :  { %v392_v21 = vsel %vm378_vm4, %v345_v20, 0.0  ;;  %v394_v22 = vsel %vm378_vm4, %v347_v3, 0.0 }
 0x10f   :  { %v393_v23 = vadd.f32 %v392_v21, %v391_v2 }
 0x111   :  { %v395_v24 = vadd.f32 %v394_v22, %v393_v23  ;;  %v349_v25 = vpop.permute.xlu1 %348  ;;  %v351_v26 = vpop.permute.xlu0 %350 }
 0x112   :  { %v396_v27 = vsel %vm378_vm4, %v349_v25, 0.0  ;;  %v398_v28 = vsel %vm378_vm4, %v351_v26, 0.0 }
 0x113   :  { %v397_v29 = vadd.f32 %v396_v27, %v395_v24 }
 0x115   :  { %v399_v30 = vadd.f32 %v398_v28, %v397_v29  ;;  %v353_v31 = vpop.permute.xlu1 %352  ;;  %v355_v32 = vpop.permute.xlu0 %354 }
 0x116   :  { %v400_v4 = vsel %vm378_vm4, %v353_v31, 0.0  ;;  %v402_v5 = vsel %vm378_vm4, %v355_v32, 0.0 }
 0x117   :  { %v401_v33 = vadd.f32 %v400_v4, %v399_v30 }
 0x119   :  { %v403_v34 = vadd.f32 %v402_v5, %v401_v33  ;;  %v357_v35 = vpop.permute.xlu1 %356  ;;  %v359_v36 = vpop.permute.xlu0 %358 }
 0x11a   :  { %v404_v12 = vsel %vm378_vm4, %v357_v35, 0.0  ;;  %v406_v13 = vsel %vm378_vm4, %v359_v36, 0.0 }
 0x11b   :  { %v405_v37 = vadd.f32 %v404_v12, %v403_v34 }
 0x11d   :  { %v407_v38 = vadd.f32 %v406_v13, %v405_v37  ;;  %v361_v39 = vpop.permute.xlu1 %360 }
 0x11e   :  { %v408_v40 = vsel %vm378_vm4, %v361_v39, 0.0 }
 0x11f   :  { %v409_v41 = vadd.f32 %v408_v40, %v407_v38 }
 0x121   :  { %410 = vadd.xlane.f32.xlu1 %v409_v41 }
 0x153   :  { %v289_v42 = vpop.xlane.xlu0 %288 }
 0x154   :  { %v290_v7 = vrot.slane %v289_v42, 4 }
 0x156   :  { %v291_v43 = vadd.f32 %v290_v7, %v289_v42 }
 0x158   :  { %v292_v44 = vrot.slane %v291_v43, 2 }
 0x15a   :  { %v293_v45 = vadd.f32 %v292_v44, %v291_v43 }
 0x15c   :  { %v294_v46 = vrot.slane %v293_v45, 1 }
 0x15e   :  { %v295_v47 = vadd.f32 %v294_v46, %v293_v45 }
 0x160   :  { %441 = vpush %v295_v47 }
 0x191   :  { %s442_s21 = spop %441 }
 0x192   :  { %s297_s22 = smul.f32 0.0010416667, %s442_s21 }
 0x1ae   :  { %v411_v48 = vpop.xlane.xlu1 %410 }
 0x1af   :  { %v412_v49 = vrot.slane %v411_v48, 4 }
 0x1b1   :  { %v413_v50 = vadd.f32 %v412_v49, %v411_v48 }
 0x1b3   :  { %v414_v14 = vrot.slane %v413_v50, 2 }
 0x1b5   :  { %v415_v51 = vadd.f32 %v414_v14, %v413_v50 }
 0x1b7   :  { %v416_v15 = vrot.slane %v415_v51, 1 }
 0x1b9   :  { %v417_v52 = vadd.f32 %v416_v15, %v415_v51 }
 0x1bb   :  { %443 = vpush %v417_v52 }
 0x1ec   :  { %s444_s23 = spop %443 }
 0x1ed   :  { %s419_s24 = smul.f32 0.0010416667, %s444_s23 }
 0x1ef   :  { %s420_s25 = sadd.f32 %s419_s24, %s297_s22 }
 0x1f1   :  { %v422_v8 = vstv %s420_s25 }
 0x1f2   :  { %v423_v9 = vadd.f32 %v422_v8, %v421_v53 }
 0x1f4   :  { %425 = vst.msk [vmem:[#allocation5] sm:$0x1] %vm27_vm5, %v423_v9 }
 0x1f5   :  { %485 = shalt.err (!%p482_p12)
}
 0x1f6   :  { %s486_s3 = scalar_lea.hbm %s704_s1, 16 }
 0x1f7   :  { %p487_p13 = scmp.ne.s32.totalorder %s704_s1, %s486_s3  ;;  %p490_p0 = scmp.lt.u32.totalorder %s486_s3, %s704_s1 }
 0x1f9   :  { %p492_p1 = pnand %p490_p0, %p487_p13 }
 0x1fb   :  { %495 = shalt.err (!%p492_p1)
}
 0x1fc   :  { %435 = dma.vmem_to_hbm [thread:$0]  %s433_s27, 16, %s704_s1, [#allocation4]  }
 0x1fd   :  { %498 = dma.done.wait [#allocation4], 16  }
 0x1fe   :  { %499 = vsyncadd [#allocation4], 4294967280 }
 0x1ff   :  { %439 = vsyncpa [#allocation3], 1 }
 0x200   :  { %440 = vsyncpa [#allocation4], 1 }

</bundles_post_ra>
